<compile_context>
chip_gen: v7x
topology: tpu7x:2x2x1
jax: 0.10.0
libtpu: 0.0.40
codegen_flags: <defaults>
</compile_context>

<pallas_src>
import math

import jax
import jax.numpy as jnp
from jax.experimental import pallas as pl
from jax.experimental.pallas import tpu as pltpu


def _round_up(x, m):
    return ((x + m - 1) // m) * m


def _vmem_capacity_bytes():
    try:
        return int(pltpu.get_tpu_info().vmem_capacity_bytes)
    except Exception:
        return 64 * 1024 * 1024  # conservative: v7x per-TensorCore VMEM


# ---------------------------------------------------------------------------
# Path 1: weights resident in VMEM -> single-pass log-softmax over lanes
# ---------------------------------------------------------------------------
def _proj_logsoftmax_resident_kernel(x_ref, w_ref, b_ref, o_ref):
    # bf16 operands on the MXU, f32 accumulation.
    logits = jnp.dot(x_ref[...].astype(jnp.bfloat16), w_ref[...],
                     preferred_element_type=jnp.float32)
    logits = logits + b_ref[...]
    m = jnp.max(logits, axis=-1, keepdims=True)
    shifted = logits - m
    lse = jnp.log(jnp.sum(jnp.exp(shifted), axis=-1, keepdims=True))
    o_ref[...] = (shifted - lse).astype(o_ref.dtype)


# ---------------------------------------------------------------------------
# Path 2: vocab-tiled, two sweeps over vocab tiles with online logsumexp
#   p == 0: accumulate running row-max / sum-exp into VMEM scratch
#   p == 1: recompute the logits tile and write (logits - lse)
# ---------------------------------------------------------------------------
def _proj_logsoftmax_tiled_kernel(x_ref, w_ref, b_ref, o_ref, m_sc, s_sc):
    p = pl.program_id(1)  # 0: stats sweep, 1: write sweep
    j = pl.program_id(2)  # vocab tile index

    logits = jnp.dot(x_ref[...].astype(jnp.bfloat16), w_ref[...],
                     preferred_element_type=jnp.float32)
    logits = logits + b_ref[...]

    @pl.when(jnp.logical_and(p == 0, j == 0))
    def _():
        m_sc[...] = jnp.full_like(m_sc, -jnp.inf)
        s_sc[...] = jnp.zeros_like(s_sc)

    @pl.when(p == 0)
    def _():
        m_prev = m_sc[...]
        m_new = jnp.maximum(m_prev, jnp.max(logits, axis=-1, keepdims=True))
        s_sc[...] = (s_sc[...] * jnp.exp(m_prev - m_new)
                     + jnp.sum(jnp.exp(logits - m_new), axis=-1, keepdims=True))
        m_sc[...] = m_new

    @pl.when(p == 1)
    def _():
        lse = m_sc[...] + jnp.log(s_sc[...])
        o_ref[...] = (logits - lse).astype(o_ref.dtype)


# ---------------------------------------------------------------------------
# VMEM planning (generation-aware)
# ---------------------------------------------------------------------------
def _plan(n, d, v128, x_it, w_it, out_it):
    cap = _vmem_capacity_bytes()
    budget = int(cap * 0.65)        # headroom for Mosaic internals / spills
    vmem_limit = int(cap * 0.85)    # explicit scoped-VMEM limit for the call

    # Resident path: W/b are DMA'd once but double-buffered by default -> x2.
    # Per row tile: double-buffered x/out tiles + ~3 live (TR, V) f32 temps
    # across the max / exp-sum / broadcast-subtract epilogue chain.
    resident = 2 * d * v128 * w_it + 2 * v128 * 4
    per_row = 2 * d * x_it + 2 * v128 * out_it + 3 * 4 * v128
    avail = budget - resident
    tr = avail // per_row if avail > 0 else 0
    if tr >= min(n, 64):
        tr = int(min(tr, 1024, n))
        if tr < n:
            # Align M to the MXU (256 on v6e/v7x) when possible, else sublanes.
            tr = (tr // 256) * 256 if tr >= 256 else (tr // 8) * 8
        return dict(mode="resident", tr=max(tr, 1), tv=None,
                    vmem_limit=vmem_limit)

    # Vocab-tiled path: pick the largest lane-dense vocab tile that fits.
    tr = n if n <= 256 else 256
    tv = 128
    for cand in (4096, 2048, 1024, 512, 256, 128):
        est = (2 * tr * d * x_it + 2 * d * cand * w_it + 2 * cand * 4
               + 2 * tr * cand * out_it + 3 * 4 * tr * cand + 2 * tr * 4)
        if est <= budget:
            tv = cand
            break
    return dict(mode="tiled", tr=tr, tv=tv, vmem_limit=vmem_limit)


# ---------------------------------------------------------------------------
# ProjectionLayer.forward
# ---------------------------------------------------------------------------
def projection_log_softmax(x, w, b, *, row_tile=None, vocab_tile=None):
    """log_softmax(x @ w + b, axis=-1).  x: (..., d_model), w: (d_model, V),
    b: (V,).  `vocab_tile` forces the vocab-tiled online-logsumexp path."""
    *lead, d = x.shape
    v = w.shape[1]
    x2d = x.reshape(-1, d)
    n = x2d.shape[0]
    out_dtype = x.dtype

    # MXU peak is bf16 on v5e/v6e/v7x: keep W in bf16 (halves resident VMEM and
    # HBM traffic); bias stays f32 and is added post-MXU in f32.
    w_bf = w.astype(jnp.bfloat16)
    b_f32 = b.astype(jnp.float32)

    x_it = jnp.dtype(x.dtype).itemsize
    w_it = jnp.dtype(w_bf.dtype).itemsize
    out_it = jnp.dtype(out_dtype).itemsize

    v128 = _round_up(v, 128)
    plan = _plan(n, d, v128, x_it, w_it, out_it)
    if vocab_tile is not None:
        plan["mode"] = "tiled"
        plan["tv"] = int(vocab_tile)
    if row_tile is not None:
        plan["tr"] = int(min(row_tile, n))
    mode, tr, tv = plan["mode"], plan["tr"], plan["tv"]

    # Lane-dense vocab: pad to a multiple of 128 (of the vocab tile when tiled)
    # with bias = -1e30 on padded columns; exp(-1e30) == 0 leaves the softmax
    # over real columns unchanged, and padded columns are sliced off below.
    v_pad = _round_up(v, tv if mode == "tiled" else 128)
    if v_pad != v:
        w_bf = jnp.pad(w_bf, ((0, 0), (0, v_pad - v)))
        b_f32 = jnp.pad(b_f32, (0, v_pad - v), constant_values=-1e30)
    b2d = b_f32.reshape(1, v_pad)

    cost = pl.CostEstimate(
        flops=2 * n * d * v_pad,
        transcendentals=n * v_pad,
        bytes_accessed=(x2d.size * x_it + w_bf.size * w_it
                        + b2d.size * 4 + n * v_pad * out_it),
    )

    if mode == "resident":
        out2d = pl.pallas_call(
            _proj_logsoftmax_resident_kernel,
            out_shape=jax.ShapeDtypeStruct((n, v_pad), out_dtype),
            grid=(pl.cdiv(n, tr),),
            in_specs=[
                pl.BlockSpec((tr, d), lambda i: (i, 0)),     # activations: row-tiled
                pl.BlockSpec((d, v_pad), lambda i: (0, 0)),  # weights: VMEM-resident
                pl.BlockSpec((1, v_pad), lambda i: (0, 0)),  # bias: VMEM-resident
            ],
            out_specs=pl.BlockSpec((tr, v_pad), lambda i: (i, 0)),
            compiler_params=pltpu.CompilerParams(
                dimension_semantics=("parallel",),
                vmem_limit_bytes=plan["vmem_limit"]),
            cost_estimate=cost,
        )(x2d, w_bf, b2d)
    else:
        nv = v_pad // tv
        out2d = pl.pallas_call(
            _proj_logsoftmax_tiled_kernel,
            out_shape=jax.ShapeDtypeStruct((n, v_pad), out_dtype),
            grid=(pl.cdiv(n, tr), 2, nv),
            in_specs=[
                pl.BlockSpec((tr, d), lambda i, p, j: (i, 0)),  # x resident per row tile
                pl.BlockSpec((d, tv), lambda i, p, j: (0, j)),  # weight vocab tile
                pl.BlockSpec((1, tv), lambda i, p, j: (0, j)),  # bias vocab tile
            ],
            # p == 0 (stats sweep): park the output window on block (i, 0) and
            # never write it -> no garbage writeback; p == 1 writes (i, j).
            out_specs=pl.BlockSpec((tr, tv), lambda i, p, j: (i, j * p)),
            scratch_shapes=[pltpu.VMEM((tr, 1), jnp.float32),   # running row max
                            pltpu.VMEM((tr, 1), jnp.float32)],  # running sum-exp
            compiler_params=pltpu.CompilerParams(
                dimension_semantics=("parallel", "arbitrary", "arbitrary"),
                vmem_limit_bytes=plan["vmem_limit"]),
            cost_estimate=cost,
        )(x2d, w_bf, b2d)

    # TODO(synk): on v5e, optionally emit bf16 output (halves vst/HBM writeback)
    # when downstream tolerates it.
    if v_pad != v:
        out2d = out2d[:, :v]
    return out2d.reshape(*lead, v)


if __name__ == "__main__":
    def make_inputs(key, B, S, d_model, vocab):
        kx, kw, kb = jax.random.split(key, 3)
        x = jax.random.normal(kx, (B, S, d_model), dtype=jnp.float32)
        bound = 1.0 / math.sqrt(d_model)  # nn.Linear default init
        w = jax.random.uniform(kw, (d_model, vocab), jnp.float32, -bound, bound)
        b = jax.random.uniform(kb, (vocab,), jnp.float32, -bound, bound)
        return x, w, b

    def check(out, x, w, b):
        ref = jax.nn.log_softmax(jnp.einsum("bsd,dv->bsv", x, w) + b, axis=-1)
        assert out.shape == ref.shape
        err = float(jnp.max(jnp.abs(out - ref)))
        assert bool(jnp.allclose(out, ref, atol=2e-2, rtol=2e-2)), err

    # 1) Small shapes -> VMEM-resident weight path.
    B, S, d_model, vocab = 2, 8, 32, 128
    x, w, b = make_inputs(jax.random.PRNGKey(0), B, S, d_model, vocab)
    out = projection_log_softmax(x, w, b)
    jax.block_until_ready(out)
    check(out, x, w, b)

    # 2) Force the vocab-tiled online-logsumexp path (the one an LM-head-scale
    #    vocab selects automatically); vocab=200 also exercises lane padding.
    x2, w2, b2 = make_inputs(jax.random.PRNGKey(1), 2, 8, 32, 200)
    out2 = projection_log_softmax(x2, w2, b2, row_tile=8, vocab_tile=128)
    jax.block_until_ready(out2)
    check(out2, x2, w2, b2)

    print("KERNEL_OK")
</pallas_src>

<mosaic_0001>
module attributes {stable_mosaic.version = 11 : i64} {
  func.func @_proj_logsoftmax_resident_kernel(%arg0: i32, %arg1: memref<16x32xf32, #tpu.memory_space<vmem>>, %arg2: memref<32x128xbf16, #tpu.memory_space<vmem>>, %arg3: memref<1x128xf32, #tpu.memory_space<vmem>>, %arg4: memref<16x128xf32, #tpu.memory_space<vmem>>) attributes {dimension_semantics = [#tpu.dimension_semantics<parallel>], iteration_bounds = array<i64: 1>, scalar_prefetch = 0 : i64, scratch_operands = 0 : i64, tpu.core_type = #tpu.core_type<tc>, window_params = [{transform_indices = @transform_0, window_bounds = array<i64: 16, 32>}, {pipeline_mode = #tpu.pipeline_mode<synchronous>, transform_indices = @transform_1, window_bounds = array<i64: 32, 128>}, {pipeline_mode = #tpu.pipeline_mode<synchronous>, transform_indices = @transform_2, window_bounds = array<i64: 1, 128>}, {transform_indices = @transform_3, window_bounds = array<i64: 16, 128>}]} {
    %c0 = arith.constant 0 : index
    %c0_0 = arith.constant 0 : index
    %0 = vector.load %arg1[%c0, %c0_0] : memref<16x32xf32, #tpu.memory_space<vmem>>, vector<16x32xf32>
    %1 = arith.truncf %0 : vector<16x32xf32> to vector<16x32xbf16>
    %c0_1 = arith.constant 0 : index
    %c0_2 = arith.constant 0 : index
    %2 = vector.load %arg2[%c0_1, %c0_2] : memref<32x128xbf16, #tpu.memory_space<vmem>>, vector<32x128xbf16>
    %cst = arith.constant dense<0.000000e+00> : vector<16x128xf32>
    %3 = tpu.matmul %1, %2, %cst {dimension_numbers = #tpu.dot_dimension_numbers<[1], [0], [0], [1], [0, 0, 1, 1], [], []>} : vector<16x32xbf16>, vector<32x128xbf16>, vector<16x128xf32> -> vector<16x128xf32>
    %c0_3 = arith.constant 0 : index
    %c0_4 = arith.constant 0 : index
    %4 = vector.load %arg3[%c0_3, %c0_4] : memref<1x128xf32, #tpu.memory_space<vmem>>, vector<1x128xf32>
    %5 = vector.broadcast %4 : vector<1x128xf32> to vector<16x128xf32>
    %6 = arith.addf %3, %5 : vector<16x128xf32>
    %cst_5 = arith.constant dense<0xFF800000> : vector<16xf32>
    %7 = vector.multi_reduction <maximumf>, %6, %cst_5 [1] : vector<16x128xf32> to vector<16xf32>
    %8 = vector.shape_cast %7 : vector<16xf32> to vector<16x1xf32>
    %9 = vector.broadcast %8 : vector<16x1xf32> to vector<16x128xf32>
    %10 = arith.subf %6, %9 : vector<16x128xf32>
    %11 = math.exp %10 : vector<16x128xf32>
    %cst_6 = arith.constant dense<0.000000e+00> : vector<16xf32>
    %12 = vector.multi_reduction <add>, %11, %cst_6 [1] : vector<16x128xf32> to vector<16xf32>
    %13 = vector.shape_cast %12 : vector<16xf32> to vector<16x1xf32>
    %14 = math.log %13 : vector<16x1xf32>
    %15 = vector.broadcast %14 : vector<16x1xf32> to vector<16x128xf32>
    %16 = arith.subf %10, %15 : vector<16x128xf32>
    %c0_7 = arith.constant 0 : index
    %c0_8 = arith.constant 0 : index
    %17 = vector.load %arg4[%c0_7, %c0_8] : memref<16x128xf32, #tpu.memory_space<vmem>>, vector<16x128xf32>
    tpu.vector_store %arg4[%c0_7, %c0_8], %16 {strides = array<i32>} : memref<16x128xf32, #tpu.memory_space<vmem>>, vector<16x128xf32>,
    return
  }
  func.func @transform_0(%arg0: i32) -> (i32, i32) {
    %c0_i32 = arith.constant 0 : i32
    %c0_i32_0 = arith.constant 0 : i32
    return %arg0, %c0_i32 : i32, i32
  }
  func.func @transform_1(%arg0: i32) -> (i32, i32) {
    %c0_i32 = arith.constant 0 : i32
    %c0_i32_0 = arith.constant 0 : i32
    %c0_i32_1 = arith.constant 0 : i32
    return %c0_i32, %c0_i32_0 : i32, i32
  }
  func.func @transform_2(%arg0: i32) -> (i32, i32) {
    %c0_i32 = arith.constant 0 : i32
    %c0_i32_0 = arith.constant 0 : i32
    %c0_i32_1 = arith.constant 0 : i32
    return %c0_i32, %c0_i32_0 : i32, i32
  }
  func.func @transform_3(%arg0: i32) -> (i32, i32) {
    %c0_i32 = arith.constant 0 : i32
    %c0_i32_0 = arith.constant 0 : i32
    return %arg0, %c0_i32 : i32, i32
  }
}

</mosaic_0001>

<bundles_post_ra>
// kernel: tpu_custom_call.1
= control target key start
LH: loop header
LB: loop body
LE: loop exit
PB: predicated region body
PF: predicated region fallthrough
CT: control target
= control target key end

     0   :  { %8 = vsyncpa [#allocation3], 0  ;;  %s335_s0 = inlined_call_operand.hbm [shape: f32[16,32], index: 0, kind: input, shape index: {}]   ;;  %s336_s1 = inlined_call_operand.hbm [shape: bf16[32,128], index: 1, kind: input, shape index: {}]   ;;  %s337_s2 = inlined_call_operand.vmem [shape: f32[1,128], index: 2, kind: input, shape index: {}]   ;;  %s338_s3 = inlined_call_operand.hbm [shape: f32[16,128], index: 3, kind: output, shape index: {}]  }
   0x1   :  { %9 = vsyncpa [#allocation6], 0 }
   0x2   :  { %10 = vsyncpa [#allocation4], 0  ;;  %s261_s12 = smov [#allocation2]   ;;  %s189_s16 = scalar_lea.hbm %s335_s0, 256 }
   0x3   :  { %s16_s13 = sshll.u32 %s261_s12, 4  ;;  %p190_p0 = scmp.ne.s32.totalorder %s335_s0, %s189_s16  ;;  %s17_s13 = int_to_ptr.vmem [resolvable:$true] %s16_s13 }
   0x4   :  { %p193_p1 = scmp.lt.u32.totalorder %s189_s16, %s335_s0 }
   0x6   :  { %p195_p2 = pnand %p193_p1, %p190_p0 }
   0x8   :  { %198 = shalt.err (!%p195_p2)
}
   0x9   :  { %s199_s21 = scalar_lea.vmem %s17_s13, 256  ;;  %p204_p4 = scmp.lt.s32.totalorder %s17_s13, %s17_s13 }
   0xa   :  { %p200_p3 = scmp.ne.s32.totalorder %s17_s13, %s199_s21  ;;  %p205_p5 = scmp.lt.s32.totalorder %s199_s21, %s199_s21 }
   0xc   :  { %p206_p6 = por %p205_p5, %p204_p4 }
   0xe   :  { %p207_p7 = pnand %p206_p6, %p200_p3 }
  0x10   :  { %210 = shalt.err (!%p207_p7)
}
  0x11   :  { %s262_s22 = smov 128   ;;  %s263_s23 = smov 8  }
  0x12   :  { %22 = dma.hbm_to_vmem [thread:$0]  %s335_s0, 256, %s17_s13, [#allocation3], %s262_s22, %s262_s22, %s263_s23  }
  0x13   :  { %s264_s26 = smov [#allocation5]   ;;  %s211_s30 = scalar_lea.hbm %s336_s1, 256 }
  0x14   :  { %s28_s27 = sshll.u32 %s264_s26, 4  ;;  %p212_p8 = scmp.ne.s32.totalorder %s336_s1, %s211_s30  ;;  %s29_s27 = int_to_ptr.vmem [resolvable:$true] %s28_s27 }
  0x15   :  { %p215_p9 = scmp.lt.u32.totalorder %s211_s30, %s336_s1 }
  0x17   :  { %p217_p10 = pnand %p215_p9, %p212_p8 }
  0x19   :  { %220 = shalt.err (!%p217_p10)
}
  0x1a   :  { %s221_s8 = scalar_lea.vmem %s29_s27, 256  ;;  %p226_p12 = scmp.lt.s32.totalorder %s29_s27, %s29_s27 }
  0x1b   :  { %p222_p11 = scmp.ne.s32.totalorder %s29_s27, %s221_s8  ;;  %p227_p13 = scmp.lt.s32.totalorder %s221_s8, %s221_s8 }
  0x1d   :  { %p228_p0 = por %p227_p13, %p226_p12 }
  0x1f   :  { %p229_p1 = pnand %p228_p0, %p222_p11 }
  0x21   :  { %232 = shalt.err (!%p229_p1)
}
  0x22   :  { %s265_s0 = smov 64   ;;  %s266_s9 = smov 4  }
  0x23   :  { %34 = dma.hbm_to_vmem [thread:$0]  %s336_s1, 256, %s29_s27, [#allocation6], %s265_s0, %s265_s0, %s266_s9  }
  0x24   :  { %255 = dma.done.wait [#allocation3], 256  }
  0x25   :  { %256 = vsyncadd [#allocation3], 4294967040 }
  0x26   :  { %257 = dma.done.wait [#allocation6], 256  }
  0x27   :  { %258 = vsyncadd [#allocation6], 4294967040  ;;  %v267_v0 = vmov 0.0   ;;  %vm268_vm0 = vmmov 0   ;;  %v179_v1 = vld [vmem:[#allocation5] sm:$0xff]   ;;  %v180_v2 = vld [vmem:[#allocation5 + $0x8] sm:$0xff]  }
  0x28   :  { %162 = vmatprep.subr.bf16.mxu0 %v267_v0  ;;  %166 = vmatprep.mubr.msk.bf16.mxu0 %vm268_vm0, %v267_v0  ;;  %v44_v3 = vld [vmem:[#allocation2] sm:$0xff]  ;;  %v45_v4 = vld [vmem:[#allocation2 + $0x8] sm:$0xff]  ;;  %vm70_vm1 = vcmask 261120  }
  0x29   :  { %163 = vmatpush3.bf16.msra.mxu0 %v179_v1  ;;  %v46_v5 = vpack.c.bf16 %v45_v4, %v44_v3  ;;  %v155_v6 = vld [vmem:[%s337_s2] ss:$0 sm:$0xff]  ;;  %s269_s2 = smov [#allocation7]  }
  0x2a   :  { %164 = vmatprep.subr.bf16.mxu0 %v267_v0  ;;  %s142_s13 = sshll.u32 %s269_s2, 4  ;;  %s143_s13 = int_to_ptr.vmem [resolvable:$true] %s142_s13 }
  0x2b   :  { %s233_s14 = scalar_lea.vmem %s143_s13, 256  ;;  %p238_p3 = scmp.lt.s32.totalorder %s143_s13, %s143_s13 }
  0x2c   :  { %p234_p2 = scmp.ne.s32.totalorder %s143_s13, %s233_s14  ;;  %p239_p4 = scmp.lt.s32.totalorder %s233_s14, %s233_s14 }
  0x2d   :  { %165 = vmatpush3.bf16.msra.mxu0 %v180_v2 }
  0x2e   :  { %p240_p5 = por %p239_p4, %p238_p3 }
  0x30   :  { %167 = vmatmul.mubr.msk.bf16.vlgmr.msra.gmra.mrb[0].mxu0 %vm70_vm1, %v46_v5  ;;  %p241_p6 = pnand %p240_p5, %p234_p2 }
 0x103   :  { %v108_v7 = vpop.f32.mrb[0].mxu0 }
 0x104   :  { %v109_v8 = vadd.f32 %v155_v6, %v108_v7  ;;  %v168_v9 = vpop.f32.mrb[1].mxu0 }
 0x105   :  { %v111_v10 = vpop.f32.mrb[2].mxu0 }
 0x106   :  { %115 = vmax.xlane.f32.xlu0 %v109_v8  ;;  %v169_v11 = vpop.f32.mrb[3].mxu0  ;;  %v112_v12 = vadd.f32 %v155_v6, %v111_v10 }
 0x10a   :  { %117 = vmax.xlane.f32.xlu0 %v112_v12 }
 0x193   :  { %v116_v13 = vpop.xlane.xlu0 %115 }
 0x194   :  { %v119_v14 = vsub.f32 %v109_v8, %v116_v13 }
 0x196   :  { %v121_v15 = vmul.f32 1.442695, %v119_v14 }
 0x197   :  { %v118_v16 = vpop.xlane.xlu0 %117 }
 0x198   :  { %v120_v17 = vsub.f32 %v112_v12, %v118_v16  ;;  %181 = vpow2.f32 %v121_v15 }
 0x19a   :  { %v123_v18 = vmul.f32 1.442695, %v120_v17 }
 0x19c   :  { %183 = vpow2.f32 %v123_v18 }
 0x1a2   :  { %v182_v19 = vpop.eup %181 }
 0x1a3   :  { %125 = vadd.xlane.f32.xlu1 %v182_v19 }
 0x1a6   :  { %v184_v20 = vpop.eup %183 }
 0x1a7   :  { %127 = vadd.xlane.f32.xlu1 %v184_v20 }
 0x230   :  { %v126_v21 = vpop.xlane.xlu1 %125 }
 0x231   :  { %185 = vlog2.f32 %v126_v21 }
 0x234   :  { %v128_v22 = vpop.xlane.xlu1 %127 }
 0x235   :  { %187 = vlog2.f32 %v128_v22 }
 0x23b   :  { %v186_v23 = vpop.eup %185 }
 0x23c   :  { %v130_v24 = vmul.f32 0.6931472, %v186_v23 }
 0x23e   :  { %v133_v25 = vsub.f32 %v119_v14, %v130_v24 }
 0x23f   :  { %v188_v26 = vpop.eup %187 }
 0x240   :  { %135 = vst [vmem:[#allocation7] sm:$0xff] %v133_v25  ;;  %v132_v27 = vmul.f32 0.6931472, %v188_v26 }
 0x242   :  { %v134_v28 = vsub.f32 %v120_v17, %v132_v27 }
 0x244   :  { %136 = vst [vmem:[#allocation7 + $0x8] sm:$0xff] %v134_v28 }
 0x245   :  { %244 = shalt.err (!%p241_p6)
}
 0x246   :  { %s245_s17 = scalar_lea.hbm %s338_s3, 256 }
 0x247   :  { %p246_p7 = scmp.ne.s32.totalorder %s338_s3, %s245_s17  ;;  %p249_p8 = scmp.lt.u32.totalorder %s245_s17, %s338_s3 }
 0x249   :  { %p251_p9 = pnand %p249_p8, %p246_p7 }
 0x24b   :  { %254 = shalt.err (!%p251_p9)
}
 0x24c   :  { %148 = dma.vmem_to_hbm [thread:$0]  %s143_s13, 256, %s338_s3, [#allocation4], %s262_s22, %s262_s22, %s263_s23  }
 0x24d   :  { %259 = dma.done.wait [#allocation4], 256  }
 0x24e   :  { %260 = vsyncadd [#allocation4], 4294967040 }
 0x24f   :  { %152 = vsyncpa [#allocation3], 1 }
 0x250   :  { %153 = vsyncpa [#allocation6], 1 }
 0x251   :  { %154 = vsyncpa [#allocation4], 1 }

</bundles_post_ra>
